<compile_context>
chip_gen: v7x
topology: tpu7x:2x2x1
jax: 0.10.0
libtpu: 0.0.40
codegen_flags: <defaults>
</compile_context>

<pallas_src>
import jax
import jax.numpy as jnp
from jax import lax
from jax.experimental import pallas as pl
from jax.experimental.pallas import tpu as pltpu


def _pick_tile(total, target, align):
    """Largest divisor of `total` that is <= target and a multiple of `align`;
    falls back to `total` (full extent, always legal) if none exists."""
    if total <= target:
        return total
    for t in range(target, align - 1, -1):
        if total % t == 0 and t % align == 0:
            return t
    return total


def _vmem_limit(est_bytes):
    """Explicit scoped-VMEM limit from a per-step byte estimate (with margin),
    clamped to [32 MiB, 48 MiB] so it is safe on v5e/v6e/v7x."""
    lim = int(est_bytes * 1.5) + (2 << 20)
    return int(min(48 << 20, max(32 << 20, lim)))


# ---------------- 1x1 conv (channel matmul) kernels ----------------

def _conv1x1_kernel(x_ref, w_ref, b_ref, o_ref):
    # x_ref: (1, Cin, THW), w_ref: (Cout, Cin), b_ref: (Cout, 1) f32
    y = jnp.dot(w_ref[...], x_ref[0], preferred_element_type=jnp.float32)
    o_ref[0] = (y + b_ref[...]).astype(o_ref.dtype)


def _conv1x1_res_kernel(x_ref, w_ref, b_ref, r_ref, o_ref):
    # same as above, plus the residual add (the `+ inp` of the module), in f32
    y = jnp.dot(w_ref[...], x_ref[0], preferred_element_type=jnp.float32)
    o_ref[0] = (y + b_ref[...] + r_ref[0].astype(jnp.float32)).astype(o_ref.dtype)


def _conv_hw_tile(HW, B, target):
    """Lane-dense HW tile: prefer ~512-wide tiles (near-roofline per docs) but
    keep >=4 pipeline steps for large HW and >=2 grid units when B == 1 so the
    second TensorCore (v7x megacore) is never idle."""
    tgt = max(128, min(target, max(512, ((HW // 4) // 128) * 128)))
    thw = _pick_tile(HW, tgt, 128)
    if B == 1 and HW // thw < 2:
        half = thw // 2
        if half >= 128 and half % 128 == 0 and HW % half == 0:
            thw = half
    return thw


def conv1x1(x2d, w, b, residual=None, *, out_dtype, hw_tile_target=1024):
    """1x1 conv as channel matmul. x2d: (B, Cin, HW) -> (B, Cout, HW).

    x2d and w are expected to already be in the MXU operand dtype (the wrapper
    pre-casts once, so there are no per-grid-step casts).  Bias / residual /
    accumulation stay f32; the store is cast to `out_dtype`.
    """
    B, Cin, HW = x2d.shape
    Cout = w.shape[0]
    b2 = b.reshape(Cout, 1).astype(jnp.float32)

    thw = _conv_hw_tile(HW, B, hw_tile_target)
    n_hw = HW // thw

    in_specs = [
        pl.BlockSpec((1, Cin, thw), lambda i, t: (i, 0, t)),
        pl.BlockSpec((Cout, Cin), lambda i, t: (0, 0)),   # resident weights
        pl.BlockSpec((Cout, 1), lambda i, t: (0, 0)),
    ]
    args = (x2d, w, b2)
    kernel = _conv1x1_kernel
    if residual is not None:
        in_specs.append(pl.BlockSpec((1, Cout, thw), lambda i, t: (i, 0, t)))
        args = args + (residual,)
        kernel = _conv1x1_res_kernel

    xb = x2d.dtype.itemsize
    wb = w.dtype.itemsize
    ob = jnp.dtype(out_dtype).itemsize
    est = (2 * Cin * thw * xb + 2 * Cout * thw * ob + 2 * Cout * Cin * wb
           + Cout * thw * 4 + 2 * Cout * 4)
    bytes_accessed = (B * Cin * HW * xb + Cout * Cin * wb + Cout * 4
                      + B * Cout * HW * ob)
    if residual is not None:
        rb = residual.dtype.itemsize
        est += 2 * Cout * thw * rb
        bytes_accessed += B * Cout * HW * rb
    flops = 2 * B * Cout * Cin * HW

    return pl.pallas_call(
        kernel,
        out_shape=jax.ShapeDtypeStruct((B, Cout, HW), out_dtype),
        grid=(B, n_hw),
        in_specs=in_specs,
        out_specs=pl.BlockSpec((1, Cout, thw), lambda i, t: (i, 0, t)),
        compiler_params=pltpu.CompilerParams(
            dimension_semantics=("parallel", "parallel"),
            vmem_limit_bytes=_vmem_limit(est)),
        cost_estimate=pl.CostEstimate(
            flops=int(flops), transcendentals=0,
            bytes_accessed=int(bytes_accessed)),
    )(*args)


# ---------------- attention kernel (key-tiled, exact column softmax) ----------------

def _attention_kernel(theta_ref, phi_ref, gt_ref, o_ref, acc_ref):
    j = pl.program_id(2)

    @pl.when(j == 0)
    def _():
        acc_ref[...] = jnp.zeros_like(acc_ref)

    theta = theta_ref[0]               # (M, W)   resident across the key axis
    phi = phi_ref[0]                   # (TJ, W)  key/column tile
    gt = gt_ref[0]                     # (W, TJ)  g tile, pre-transposed (lane = key)

    # s[i, j] = <theta_i, phi_j>; operands arrive pre-cast to the MXU dtype.
    # (K = W here is intrinsic to the op -- MXU is not the binding unit.)
    s = lax.dot_general(theta, phi, (((1,), (1,)), ((), ())),
                        preferred_element_type=jnp.float32)          # (M, TJ)

    # torch .softmax(-2): normalization is per key column j, hence fully
    # contained in this key tile -- exact, no online rescaling.
    m = jnp.max(s, axis=0, keepdims=True)                            # (1, TJ)
    e = jnp.exp(s - m)                                               # (M, TJ)
    d = jnp.sum(e, axis=0, keepdims=True)                            # (1, TJ)

    # Fold 1/d into the small (W, TJ) g tile instead of scaling the (M, TJ)
    # exp: ~M/W x fewer VALU multiplies per step.  Exact reciprocal keeps the
    # f32 path tight vs the reference (the divide count is only TJ per step).
    gs = gt.astype(jnp.float32) * pl.reciprocal(d, approx=False)     # (W, TJ)

    # acc[w, i] += sum_j gs[w, j] * e[i, j]  -- plain NT contraction with
    # K = TJ and N = M: lane-dense f32 accumulator, MXU-friendly output shape.
    acc_ref[...] += lax.dot_general(
        gs.astype(theta.dtype), e.astype(theta.dtype),
        (((1,), (1,)), ((), ())), preferred_element_type=jnp.float32)

    @pl.when(j == pl.num_programs(2) - 1)
    def _():
        o_ref[0, 0] = acc_ref[...].astype(o_ref.dtype)   # single lane-dense store


def attention_packed(proj3, M, W, *, key_tile_target=512, key_splits=None,
                     out_dtype=jnp.float32):
    """proj3: (B, 3*M, W), rows [theta; phi; g] stacked along axis 1.
    Returns softmax(theta @ phi^T, axis=-2) @ g, TRANSPOSED: shape (B, W, M).
    The transposed layout keeps the per-step accumulate and the final store
    lane-dense along M; the wrapper undoes it with one tiny XLA transpose."""
    B = proj3.shape[0]
    assert proj3.shape[1] == 3 * M and proj3.shape[2] == W

    # g in (B, W, M) layout: one small XLA transpose (B*M*W elements) so the
    # in-kernel denominator fold is a clean (1, TJ) broadcast onto (W, TJ).
    gT = jnp.swapaxes(proj3[:, 2 * M:, :], 1, 2)

    packed = (M % 8 == 0)
    if packed:
        # Cap TJ so the (M, TJ) f32 score/exp temporaries stay ~<= 12 MiB:
        # safe on v7x (64 MiB VMEM) including residents and double buffers.
        # TODO(synk): raise toward 512-1024 on v5e/v6e (128 MiB VMEM) via
        # pltpu.get_tpu_info, and add a two-pass query(M)-tiled softmax to
        # allow larger TJ on v7x without blowing up the temporaries.
        cap = max(128, min(key_tile_target, (12 << 20) // max(1, 12 * M)))
        cap = max(128, (cap // 128) * 128)
        tj = _pick_tile(M, cap, 128)     # multiple of 128, or M itself
    else:
        tj = M
    n_key = M // tj

    # Leading "parallel" key-split axis: gives v7x's 2 TensorCores work even
    # at B == 1 (per-column softmax is exact, so key partial sums just add).
    if key_splits is None:
        key_splits = 2 if B == 1 else 1
    ks = key_splits if (key_splits >= 1 and n_key % key_splits == 0) else 1
    nks = n_key // ks

    if packed:
        # theta/phi are indexed straight out of the packed projection array:
        # no XLA-level slice copies for those operands.
        in_specs = [
            pl.BlockSpec((1, M, W), lambda p, b, j: (b, 0, 0)),              # theta
            pl.BlockSpec((1, tj, W),
                         lambda p, b, j: (b, n_key + p * nks + j, 0)),       # phi
            pl.BlockSpec((1, W, tj), lambda p, b, j: (b, 0, p * nks + j)),   # g^T
        ]
        args = (proj3, proj3, gT)
    else:
        # Fallback for awkward tiny shapes: explicit slices, full blocks.
        in_specs = [
            pl.BlockSpec((1, M, W), lambda p, b, j: (b, 0, 0)),
            pl.BlockSpec((1, M, W), lambda p, b, j: (b, 0, 0)),
            pl.BlockSpec((1, W, M), lambda p, b, j: (b, 0, 0)),
        ]
        args = (proj3[:, :M], proj3[:, M:2 * M], gT)

    pb = proj3.dtype.itemsize
    ob = jnp.dtype(out_dtype).itemsize
    est = (2 * M * W * pb + 2 * tj * W * pb + 2 * W * tj * pb
           + 2 * W * M * ob + W * M * 4 + 4 * tj * M * 4)

    flops = 4 * B * M * M * W                      # two M x M x W matmuls
    transcendentals = B * M * M + B * M            # exp + reciprocal
    bytes_accessed = 3 * B * M * W * pb + ks * B * W * M * ob

    part = pl.pallas_call(
        _attention_kernel,
        out_shape=jax.ShapeDtypeStruct((ks, B, W, M), out_dtype),
        grid=(ks, B, nks),
        in_specs=in_specs,
        out_specs=pl.BlockSpec((1, 1, W, M), lambda p, b, j: (p, b, 0, 0)),
        scratch_shapes=[pltpu.VMEM((W, M), jnp.float32)],
        compiler_params=pltpu.CompilerParams(
            dimension_semantics=("parallel", "parallel", "arbitrary"),
            vmem_limit_bytes=_vmem_limit(est)),
        cost_estimate=pl.CostEstimate(
            flops=int(flops), transcendentals=int(transcendentals),
            bytes_accessed=int(bytes_accessed)),
    )(*args)

    return part[0] if ks == 1 else jnp.sum(part, axis=0)


# ---------------- parameters (deterministic, PyTorch Conv2d-style init) ----------------

def init_params(key, in_channels):
    c = in_channels
    ch = c // 2
    ks = jax.random.split(key, 8)

    def lin(k, fan_in, shape):
        bound = 1.0 / jnp.sqrt(jnp.float32(fan_in))
        return jax.random.uniform(k, shape, jnp.float32, -bound, bound)

    return {
        "w_theta": lin(ks[0], c, (ch, c)),
        "b_theta": lin(ks[1], c, (ch,)),
        "w_phi":   lin(ks[2], c, (ch, c)),
        "b_phi":   lin(ks[3], c, (ch,)),
        "w_g":     lin(ks[4], c, (ch, c)),
        "b_g":     lin(ks[5], c, (ch,)),
        "w_out":   lin(ks[6], ch, (c, ch)),
        "b_out":   lin(ks[7], ch, (c,)),
    }


# ---------------- forward ----------------

def non_local_block(x, params, *, compute_dtype=jnp.bfloat16,
                    key_tile_target=512, hw_tile_target=1024, key_splits=None):
    """x: (B, C, H, W) NCHW (or (C, H, W), auto-unsqueezed like PyTorch).

    compute_dtype is the MXU operand dtype (default bf16 for v6e/v7x peak);
    softmax, bias adds, residual and all accumulation stay f32.  Pass
    compute_dtype=jnp.float32 for a bit-tight match to the reference."""
    squeeze = False
    if x.ndim == 3:
        x = x[None]
        squeeze = True
    B, C, H, Wd = x.shape
    Ch = C // 2
    HW = H * Wd
    M = Ch * H
    cdt = jnp.dtype(compute_dtype)

    x2d = x.reshape(B, C, HW)

    # fused theta/phi/g 1x1 convs as one Pallas channel matmul; weights and
    # activations pre-cast ONCE to the MXU dtype (no per-grid-step casts).
    w_tpg = jnp.concatenate(
        [params["w_theta"], params["w_phi"], params["w_g"]], axis=0).astype(cdt)
    b_tpg = jnp.concatenate(
        [params["b_theta"], params["b_phi"], params["b_g"]], axis=0)
    proj = conv1x1(x2d.astype(cdt), w_tpg, b_tpg, out_dtype=cdt,
                   hw_tile_target=hw_tile_target)            # (B, 3*Ch, HW)

    # contiguous (free) reshape: rows [0,M)=theta, [M,2M)=phi, [2M,3M)=g
    proj3 = proj.reshape(B, 3 * M, Wd)
    tpgT = attention_packed(proj3, M, Wd, key_tile_target=key_tile_target,
                            key_splits=key_splits, out_dtype=cdt)   # (B, W, M)

    # (B, W, M) -> (B, M, W) -> 'b (x y) z -> b x y z' flattened to (B, Ch, HW).
    # One cheap XLA transpose of a small intermediate; keeps the in-kernel
    # accumulate/store lane-dense along M.
    tpg2d = jnp.swapaxes(tpgT, 1, 2).reshape(B, Ch, HW)

    # out 1x1 conv + bias + residual (bias/residual in f32, lane-dense stores).
    # TODO(synk): fuse this conv + residual into the attention finalize; it
    # needs an in-kernel (W, M) -> (C, HW-tile) relayout that is kept out of
    # this version for lowering robustness.
    out2d = conv1x1(tpg2d, params["w_out"].astype(cdt), params["b_out"],
                    residual=x2d, out_dtype=x.dtype,
                    hw_tile_target=hw_tile_target)
    out = out2d.reshape(B, C, H, Wd)
    if squeeze:
        out = out[0]
    return out


# ---------------- pure-JAX reference (for verification) ----------------

def non_local_block_ref(x, params):
    B, C, H, W = x.shape
    Ch = C // 2

    def conv(z, w, b):
        return jnp.einsum('oc,bchw->bohw', w, z) + b[None, :, None, None]

    theta = conv(x, params["w_theta"], params["b_theta"])
    phi = conv(x, params["w_phi"], params["b_phi"])
    g = conv(x, params["w_g"], params["b_g"])
    theta = theta.reshape(B, Ch * H, W)
    phi_t = phi.reshape(B, Ch * H, W).transpose(0, 2, 1)
    g = g.reshape(B, Ch * H, W)
    tp = jnp.einsum('bmw,bwn->bmn', theta, phi_t)
    tp = jax.nn.softmax(tp, axis=-2)
    tpg = jnp.einsum('bmn,bnw->bmw', tp, g).reshape(B, Ch, H, W)
    return conv(tpg, params["w_out"], params["b_out"]) + x


if __name__ == "__main__":
    # Case 1: module-like small shape.  f32 path must match tightly; the
    # default bf16-MXU path must match loosely.
    in_channels, B, H, W = 4, 2, 16, 16
    x = jax.random.normal(jax.random.PRNGKey(0), (B, in_channels, H, W),
                          jnp.float32)
    params = init_params(jax.random.PRNGKey(1), in_channels)
    ref = non_local_block_ref(x, params)

    out_f32 = jax.block_until_ready(
        non_local_block(x, params, compute_dtype=jnp.float32))
    assert out_f32.shape == ref.shape == (B, in_channels, H, W)
    assert jnp.allclose(out_f32, ref, rtol=1e-4, atol=1e-4), "f32 mismatch"

    out_bf16 = jax.block_until_ready(non_local_block(x, params))
    assert float(jnp.max(jnp.abs(out_bf16 - ref))) < 1e-1, "bf16 mismatch"

    # 3-D input path (PyTorch-style auto unsqueeze / squeeze).
    out_3d = jax.block_until_ready(
        non_local_block(x[0], params, compute_dtype=jnp.float32))
    assert jnp.allclose(out_3d, ref[0], rtol=1e-4, atol=1e-4), "3d mismatch"

    # Case 2: B=1 with several key tiles -- exercises multi-step accumulation,
    # the pl.when init/finalize, and the 2-way key split (v7x megacore path).
    C2, B2, H2, W2 = 16, 1, 64, 8
    x2 = jax.random.normal(jax.random.PRNGKey(2), (B2, C2, H2, W2), jnp.float32)
    params2 = init_params(jax.random.PRNGKey(3), C2)
    out2 = jax.block_until_ready(
        non_local_block(x2, params2, compute_dtype=jnp.float32,
                        key_tile_target=128))
    ref2 = non_local_block_ref(x2, params2)
    assert jnp.allclose(out2, ref2, rtol=1e-4, atol=1e-4), "case-2 mismatch"

    print("KERNEL_OK")
</pallas_src>

<mosaic_0001>
module attributes {stable_mosaic.version = 11 : i64} {
  func.func @_conv1x1_kernel(%arg0: i32, %arg1: i32, %arg2: memref<1x4x256xf32, #tpu.memory_space<vmem>>, %arg3: memref<6x4xf32, #tpu.memory_space<vmem>>, %arg4: memref<6x1xf32, #tpu.memory_space<vmem>>, %arg5: memref<1x6x256xf32, #tpu.memory_space<vmem>>) attributes {dimension_semantics = [#tpu.dimension_semantics<parallel>, #tpu.dimension_semantics<parallel>], iteration_bounds = array<i64: 2, 1>, scalar_prefetch = 0 : i64, scratch_operands = 0 : i64, tpu.core_type = #tpu.core_type<tc>, window_params = [{transform_indices = @transform_0, window_bounds = array<i64: 1, 4, 256>}, {pipeline_mode = #tpu.pipeline_mode<synchronous>, transform_indices = @transform_1, window_bounds = array<i64: 6, 4>}, {pipeline_mode = #tpu.pipeline_mode<synchronous>, transform_indices = @transform_2, window_bounds = array<i64: 6, 1>}, {transform_indices = @transform_3, window_bounds = array<i64: 1, 6, 256>}]} {
    %c0 = arith.constant 0 : index
    %c0_0 = arith.constant 0 : index
    %0 = vector.load %arg3[%c0, %c0_0] : memref<6x4xf32, #tpu.memory_space<vmem>>, vector<6x4xf32>
    %c0_1 = arith.constant 0 : index
    %c0_2 = arith.constant 0 : index
    %c0_3 = arith.constant 0 : index
    %1 = vector.load %arg2[%c0_1, %c0_2, %c0_3] : memref<1x4x256xf32, #tpu.memory_space<vmem>>, vector<1x4x256xf32>
    %2 = vector.shape_cast %1 : vector<1x4x256xf32> to vector<4x256xf32>
    %cst = arith.constant dense<0.000000e+00> : vector<6x256xf32>
    %3 = tpu.matmul %0, %2, %cst {dimension_numbers = #tpu.dot_dimension_numbers<[1], [0], [0], [1], [0, 0, 1, 1], [], []>} : vector<6x4xf32>, vector<4x256xf32>, vector<6x256xf32> -> vector<6x256xf32>
    %c0_4 = arith.constant 0 : index
    %c0_5 = arith.constant 0 : index
    %4 = vector.load %arg4[%c0_4, %c0_5] : memref<6x1xf32, #tpu.memory_space<vmem>>, vector<6x1xf32>
    %5 = vector.broadcast %4 : vector<6x1xf32> to vector<6x256xf32>
    %6 = arith.addf %3, %5 : vector<6x256xf32>
    %c0_6 = arith.constant 0 : index
    %c0_7 = arith.constant 0 : index
    %c0_8 = arith.constant 0 : index
    %7 = vector.load %arg5[%c0_6, %c0_7, %c0_8] : memref<1x6x256xf32, #tpu.memory_space<vmem>>, vector<1x6x256xf32>
    %8 = vector.shape_cast %7 : vector<1x6x256xf32> to vector<6x256xf32>
    %9 = vector.shape_cast %6 : vector<6x256xf32> to vector<1x6x256xf32>
    tpu.vector_store %arg5[%c0_6, %c0_7, %c0_8], %9 {strides = array<i32>} : memref<1x6x256xf32, #tpu.memory_space<vmem>>, vector<1x6x256xf32>,
    return
  }
  func.func @transform_0(%arg0: i32, %arg1: i32) -> (i32, i32, i32) {
    %c0_i32 = arith.constant 0 : i32
    %c0_i32_0 = arith.constant 0 : i32
    return %arg0, %c0_i32, %arg1 : i32, i32, i32
  }
  func.func @transform_1(%arg0: i32, %arg1: i32) -> (i32, i32) {
    %c0_i32 = arith.constant 0 : i32
    %c0_i32_0 = arith.constant 0 : i32
    %c0_i32_1 = arith.constant 0 : i32
    return %c0_i32, %c0_i32_0 : i32, i32
  }
  func.func @transform_2(%arg0: i32, %arg1: i32) -> (i32, i32) {
    %c0_i32 = arith.constant 0 : i32
    %c0_i32_0 = arith.constant 0 : i32
    %c0_i32_1 = arith.constant 0 : i32
    return %c0_i32, %c0_i32_0 : i32, i32
  }
  func.func @transform_3(%arg0: i32, %arg1: i32) -> (i32, i32, i32) {
    %c0_i32 = arith.constant 0 : i32
    %c0_i32_0 = arith.constant 0 : i32
    return %arg0, %c0_i32, %arg1 : i32, i32, i32
  }
}

</mosaic_0001>

<bundles_post_ra>
// kernel: tpu_custom_call.1
= control target key start
LH: loop header
LB: loop body
LE: loop exit
PB: predicated region body
PF: predicated region fallthrough
CT: control target
= control target key end

     0   :  { %s479_s12 = smov 0   ;;  %s481_s13 = smov 0   ;;  %s518_s0 = inlined_call_operand.vmem [shape: f32[2,4,256], index: 0, kind: input, shape index: {}]   ;;  %s519_s1 = inlined_call_operand.vmem [shape: f32[6,4], index: 1, kind: input, shape index: {}]   ;;  %s520_s2 = inlined_call_operand.vmem [shape: f32[6,1], index: 2, kind: input, shape index: {}]   ;;  %s521_s3 = inlined_call_operand.vmem [shape: f32[2,6,256], index: 3, kind: output, shape index: {}]  }
   0x1   :  { %s483_s14 = smov 0  }
   0x2 LB: > { %s25_s15 = sadd.s32 1, %s451_s13  ;;  %p393_p0 = scmp.ge.s32.totalorder %s455_s14, 1  ;;  %s455_s14 = sphi %s483_s14, %s13_s14   ;;  %s451_s13 = sphi %s481_s13, %s523_s13   ;;  %s447_s12 = sphi %s479_s12, %s522_s12  }
   0x3   : > { %p27_p1 = scmp.ge.s32.totalorder %s25_s15, 2  ;;  %p158_p2 = scmp.lt.s32.totalorder %s455_s14, 3 }
   0x5   : > { %s525_s15 = smov (%p27_p1, %s25_s15), 0  ;;  %p159_p3 = pnand %p393_p0, %p158_p2 }
   0x6   : > { %p191_p4 = scmp.lt.s32.totalorder (!%p159_p3), %s447_s12, 1  ;;  %v457_v0 = vmov (!%p159_p3), 0.0   ;;  %v212_v1 = vld [vmem:[%s520_s2] sm:$0x3f] (!%p159_p3)  ;;  %v458_v2 = vmov (!%p159_p3), 0   ;;  %vm224_vm0 = vcmask (!%p159_p3), 1043456  }
   0x7   : > { %162 = sbr.rel (%p159_p3) target bundleno = 238 (0xee), region = 32  ;;  %293 = vmatprep.mubr.f32.mxu0 (!%p159_p3), %v457_v0  ;;  %431 = vset.pattern.permute.xlu0 (!%p159_p3), %v458_v2  ;;  %v210_v5 = vld [vmem:[%s519_s1] sm:$0x3f] (!%p159_p3)  ;;  %vm220_vm1 = vcmask (!%p159_p3), 31744  }
   0x8   : > { %215 = vperm.xlu0 (!%p159_p3), %431, %v212_v1  }
   0xe   : > { %s527_s12 = smov (!%p191_p4, %s447_s12), 1 }
   0xf   : > { %s403_s18 = sshll.u32 %s527_s12, 3  ;;  %s404_s24 = sshll.u32 %s527_s12, 4 }
  0x10   : > { %s198_s21 = scalar_lea.vmem %s518_s0, %s403_s18  ;;  %s208_s27 = scalar_lea.vmem %s521_s3, %s404_s24 }
  0x11   : > { %v211_v3 = vld [vmem:[%s198_s21] sm:$0xff] }
  0x12   : > { %v219_v4 = vcombine.high %v211_v3, %v211_v3 }
  0x14   : > { %398 = vmatprep.subr.msk.mxu0 %vm224_vm0, %v219_v4 }
  0x15   : > { %399 = vmatpush1.msk.msra.mxu0 %vm224_vm0, %v211_v3 }
  0x16   : > { %400 = vmatmul.mubr.msk.f32.vlgmr.msra.gmra.mrb[0].mxu0 %vm220_vm1, %v210_v5 }
  0x87   : > { %v216_v6 = vpop.permute.xlu0 %215 }
  0xe9   : > { %v295_v7 = vpop.f32.mrb[0].mxu0 }
  0xea   : > { %v296_v8 = vadd.f32 %v295_v7, %v216_v6  ;;  %v297_v9 = vpop.f32.mrb[1].mxu0 }
  0xeb   : > { %v298_v10 = vadd.f32 %v297_v9, %v216_v6 }
  0xec   : > { %300 = vst [vmem:[%s208_s27] sm:$0x3f] %v296_v8 }
  0xed   : > { %301 = vst [vmem:[%s208_s27 + $0x8] sm:$0x3f] %v298_v10 }
  0xee PF: > { %s13_s14 = sadd.s32 1, %s455_s14   ;;  %s522_s12 = smov %s451_s13 }
  0xef   : > { %p10_p5 = scmp.ge.s32.totalorder %s13_s14, 4   ;;  %s523_s13 = smov %s525_s15 }
  0xf1   :  { %12 = sbr.rel (!%p10_p5) target bundleno = 2 (0x2), region = 62 }

</bundles_post_ra>
